<compile_context>
chip_gen: v6e
topology: v6e:2x2x1
jax: 0.10.0
libtpu: 0.0.40
codegen_flags: <defaults>
</compile_context>

<pallas_src>
import jax
import jax.numpy as jnp
from jax import lax
from jax.experimental import pallas as pl
from jax.experimental.pallas import tpu as pltpu


def _dsc_kernel(x_ref, weff_ref, beff_ref, o_ref):
    # x_ref:    (B_blk, nin, HW)   B_blk images, spatial flattened (lane-dense)
    # weff_ref: (K, nout, nin)     fused depthwise+pointwise weights
    # beff_ref: (nout, 1)          fused bias
    # o_ref:    (B_blk, nout, HW)  output slab (last K-1 cols of each image row
    #                              are garbage; wrapper slices them off)
    b_blk, nin, hw = x_ref.shape
    k_taps = weff_ref.shape[0]

    # Hoist weights/bias once (small, stay resident in vregs).
    w_k = [weff_ref[k] for k in range(k_taps)]     # each (nout, nin)
    beff = beff_ref[...]                           # (nout, 1)

    for b in range(b_blk):                         # B_blk is small & static
        x = x_ref[b]                               # (nin, HW) lane-dense slab
        # tap k uses x[:, p + k]; pltpu.roll(x, HW - k) gives exactly that
        # (wraparound only lands in the discarded last K-1 columns per row).
        out = jnp.dot(w_k[0], x, preferred_element_type=jnp.float32)
        for k in range(1, k_taps):
            x_k = pltpu.roll(x, hw - k, axis=1)    # XLU; x_k[:, p] = x[:, (p+k)%HW]
            out = out + jnp.dot(w_k[k], x_k, preferred_element_type=jnp.float32)
        o_ref[b] = (out + beff).astype(o_ref.dtype)


def _pick_batch_block(N, nin, nout, K, HW, vmem_budget_bytes, max_unroll=32):
    """Largest divisor of N that fits the VMEM budget, keeps >=2 grid steps."""
    # Double-buffered input/output blocks + live f32 values per image (f32).
    per_image = 4 * HW * (2 * nin + 2 * nout + K * nin + nout)
    cap = max(1, int(vmem_budget_bytes) // per_image)
    cap = min(cap, max_unroll)          # bound static in-kernel unroll
    if N >= 2:
        cap = min(cap, N // 2)          # >= 2 grid steps: v7x megacore sharding
    cap = max(1, min(cap, N))
    b_blk = 1
    for d in range(1, cap + 1):
        if N % d == 0:
            b_blk = d
    return b_blk


def depthwise_separable_conv(x, w_dw, b_dw, w_pw, b_pw,
                             *, vmem_budget_bytes=20 * 1024 * 1024):
    """x: (N, nin, H, W) float32.  Returns (N, nout, H, W-K+1) float32."""
    N, nin, H, W = x.shape
    nout, _, _, K = w_dw.shape
    assert nout % nin == 0, "groups=nin requires nout % nin == 0"
    assert W >= K, "kernel width exceeds input width"
    cmul = nout // nin
    Wout = W - K + 1
    HW = H * W

    x_flat = x.reshape(N, nin, HW)          # lane-dense spatial slab per image
    wdw2 = w_dw.reshape(nout, K)            # (nout, 1, 1, K) -> (nout, K)
    wpw2 = w_pw.reshape(nout, nout)         # (nout, nout, 1, 1) -> (nout, nout)

    # ---- Fuse depthwise into pointwise (tiny tensors, done once in XLA) ----
    # Weff[k, o, ci] = sum_{m<cmul} wpw[o, ci*cmul+m] * wdw[ci*cmul+m, k]
    prod = wpw2[:, :, None] * wdw2[None, :, :]                 # (nout, nout, K)
    grouped = prod.reshape(nout, nin, cmul, K).sum(axis=2)     # (nout, nin, K)
    w_eff = jnp.transpose(grouped, (2, 0, 1))                  # (K, nout, nin)
    b_eff = (wpw2 @ b_dw + b_pw).reshape(nout, 1)              # (nout, 1)
    # NOTE: a v5e-only option is casting w_eff / x to bf16 before the dot
    # (MXU is bf16-native there); kept f32 to preserve module numerics.

    B_blk = _pick_batch_block(N, nin, nout, K, HW, vmem_budget_bytes)
    grid = (N // B_blk,)
    # TODO(synk): for very large H*W add a second grid axis tiling HW at
    # image-row granularity (no halo needed; wrap lands in discarded columns).

    cost = pl.CostEstimate(
        flops=2 * N * HW * nout * nin * K,
        transcendentals=0,
        bytes_accessed=4 * (N * HW * (nin + nout) + K * nout * nin + nout),
    )

    out_flat = pl.pallas_call(
        _dsc_kernel,
        out_shape=jax.ShapeDtypeStruct((N, nout, HW), jnp.float32),
        grid_spec=pltpu.PrefetchScalarGridSpec(
            num_scalar_prefetch=0,
            grid=grid,
            in_specs=[
                pl.BlockSpec((B_blk, nin, HW), lambda n: (n, 0, 0)),
                pl.BlockSpec((K, nout, nin), lambda n: (0, 0, 0)),
                pl.BlockSpec((nout, 1), lambda n: (0, 0)),
            ],
            out_specs=pl.BlockSpec((B_blk, nout, HW), lambda n: (n, 0, 0)),
        ),
        compiler_params=pltpu.CompilerParams(
            dimension_semantics=("parallel",),
            vmem_limit_bytes=32 * 1024 * 1024,
        ),
        cost_estimate=cost,
    )(x_flat, w_eff, b_eff)

    # VALID conv: drop the K-1 garbage columns at the end of each image row.
    # (A downstream consumer could fuse this slice to avoid an extra HBM pass.)
    return out_flat.reshape(N, nout, H, W)[:, :, :, :Wout]


def _reference(x, w_dw, b_dw, w_pw, b_pw):
    nin = x.shape[1]
    dn = ("NCHW", "OIHW", "NCHW")
    dw = lax.conv_general_dilated(
        x, w_dw, window_strides=(1, 1), padding="VALID",
        feature_group_count=nin, dimension_numbers=dn,
    ) + b_dw[None, :, None, None]
    pw = lax.conv_general_dilated(
        dw, w_pw, window_strides=(1, 1), padding="VALID",
        dimension_numbers=dn,
    ) + b_pw[None, :, None, None]
    return pw


if __name__ == "__main__":
    # Small shapes consistent with the module: nin=4, nout=8 (groups=nin needs
    # nout % nin == 0), kernel_size=3, input (2, 4, 16, 16).
    N, nin, H, W = 2, 4, 16, 16
    nout, K = 8, 3

    key = jax.random.PRNGKey(0)
    kx, k1, k2, k3, k4 = jax.random.split(key, 5)

    x = jax.random.normal(kx, (N, nin, H, W), dtype=jnp.float32)
    w_dw = jax.random.normal(k1, (nout, 1, 1, K), dtype=jnp.float32) * 0.1
    b_dw = jax.random.normal(k2, (nout,), dtype=jnp.float32) * 0.1
    w_pw = jax.random.normal(k3, (nout, nout, 1, 1), dtype=jnp.float32) * 0.1
    b_pw = jax.random.normal(k4, (nout,), dtype=jnp.float32) * 0.1

    out = depthwise_separable_conv(x, w_dw, b_dw, w_pw, b_pw)
    out = jax.block_until_ready(out)

    ref = _reference(x, w_dw, b_dw, w_pw, b_pw)
    assert out.shape == (N, nout, H, W - K + 1), out.shape
    assert jnp.allclose(out, ref, atol=1e-4, rtol=1e-4), float(jnp.abs(out - ref).max())

    print("KERNEL_OK")
</pallas_src>

<mosaic_0001>
module attributes {stable_mosaic.version = 11 : i64} {
  func.func @_dsc_kernel(%arg0: i32, %arg1: memref<1x4x256xf32, #tpu.memory_space<vmem>>, %arg2: memref<3x8x4xf32, #tpu.memory_space<vmem>>, %arg3: memref<8x1xf32, #tpu.memory_space<vmem>>, %arg4: memref<1x8x256xf32, #tpu.memory_space<vmem>>) attributes {dimension_semantics = [#tpu.dimension_semantics<parallel>], iteration_bounds = array<i64: 2>, scalar_prefetch = 0 : i64, scratch_operands = 0 : i64, tpu.core_type = #tpu.core_type<tc>, window_params = [{transform_indices = @transform_0, window_bounds = array<i64: 1, 4, 256>}, {pipeline_mode = #tpu.pipeline_mode<synchronous>, transform_indices = @transform_1, window_bounds = array<i64: 3, 8, 4>}, {pipeline_mode = #tpu.pipeline_mode<synchronous>, transform_indices = @transform_2, window_bounds = array<i64: 8, 1>}, {transform_indices = @transform_3, window_bounds = array<i64: 1, 8, 256>}]} {
    %c0 = arith.constant 0 : index
    %c0_0 = arith.constant 0 : index
    %c0_1 = arith.constant 0 : index
    %0 = vector.load %arg2[%c0, %c0_0, %c0_1] : memref<3x8x4xf32, #tpu.memory_space<vmem>>, vector<1x8x4xf32>
    %1 = vector.shape_cast %0 : vector<1x8x4xf32> to vector<8x4xf32>
    %c1 = arith.constant 1 : index
    %c0_2 = arith.constant 0 : index
    %c0_3 = arith.constant 0 : index
    %2 = vector.load %arg2[%c1, %c0_2, %c0_3] : memref<3x8x4xf32, #tpu.memory_space<vmem>>, vector<1x8x4xf32>
    %3 = vector.shape_cast %2 : vector<1x8x4xf32> to vector<8x4xf32>
    %c2 = arith.constant 2 : index
    %c0_4 = arith.constant 0 : index
    %c0_5 = arith.constant 0 : index
    %4 = vector.load %arg2[%c2, %c0_4, %c0_5] : memref<3x8x4xf32, #tpu.memory_space<vmem>>, vector<1x8x4xf32>
    %5 = vector.shape_cast %4 : vector<1x8x4xf32> to vector<8x4xf32>
    %c0_6 = arith.constant 0 : index
    %c0_7 = arith.constant 0 : index
    %6 = vector.load %arg3[%c0_6, %c0_7] : memref<8x1xf32, #tpu.memory_space<vmem>>, vector<8x1xf32>
    %c0_8 = arith.constant 0 : index
    %c0_9 = arith.constant 0 : index
    %c0_10 = arith.constant 0 : index
    %7 = vector.load %arg1[%c0_8, %c0_9, %c0_10] : memref<1x4x256xf32, #tpu.memory_space<vmem>>, vector<1x4x256xf32>
    %8 = vector.shape_cast %7 : vector<1x4x256xf32> to vector<4x256xf32>
    %cst = arith.constant dense<0.000000e+00> : vector<8x256xf32>
    %9 = tpu.matmul %1, %8, %cst {dimension_numbers = #tpu.dot_dimension_numbers<[1], [0], [0], [1], [0, 0, 1, 1], [], []>} : vector<8x4xf32>, vector<4x256xf32>, vector<8x256xf32> -> vector<8x256xf32>
    %c255_i32 = arith.constant 255 : i32
    %10 = tpu.dynamic_rotate %8 by %c255_i32 dim 1 : vector<4x256xf32>, i32 -> vector<4x256xf32>
    %cst_11 = arith.constant dense<0.000000e+00> : vector<8x256xf32>
    %11 = tpu.matmul %3, %10, %cst_11 {dimension_numbers = #tpu.dot_dimension_numbers<[1], [0], [0], [1], [0, 0, 1, 1], [], []>} : vector<8x4xf32>, vector<4x256xf32>, vector<8x256xf32> -> vector<8x256xf32>
    %12 = arith.addf %9, %11 : vector<8x256xf32>
    %c254_i32 = arith.constant 254 : i32
    %13 = tpu.dynamic_rotate %8 by %c254_i32 dim 1 : vector<4x256xf32>, i32 -> vector<4x256xf32>
    %cst_12 = arith.constant dense<0.000000e+00> : vector<8x256xf32>
    %14 = tpu.matmul %5, %13, %cst_12 {dimension_numbers = #tpu.dot_dimension_numbers<[1], [0], [0], [1], [0, 0, 1, 1], [], []>} : vector<8x4xf32>, vector<4x256xf32>, vector<8x256xf32> -> vector<8x256xf32>
    %15 = arith.addf %12, %14 : vector<8x256xf32>
    %16 = vector.broadcast %6 : vector<8x1xf32> to vector<8x256xf32>
    %17 = arith.addf %15, %16 : vector<8x256xf32>
    %c0_13 = arith.constant 0 : index
    %c0_14 = arith.constant 0 : index
    %c0_15 = arith.constant 0 : index
    %18 = vector.load %arg4[%c0_13, %c0_14, %c0_15] : memref<1x8x256xf32, #tpu.memory_space<vmem>>, vector<1x8x256xf32>
    %19 = vector.shape_cast %18 : vector<1x8x256xf32> to vector<8x256xf32>
    %20 = vector.shape_cast %17 : vector<8x256xf32> to vector<1x8x256xf32>
    tpu.vector_store %arg4[%c0_13, %c0_14, %c0_15], %20 {strides = array<i32>} : memref<1x8x256xf32, #tpu.memory_space<vmem>>, vector<1x8x256xf32>,
    return
  }
  func.func @transform_0(%arg0: i32) -> (i32, i32, i32) {
    %c0_i32 = arith.constant 0 : i32
    %c0_i32_0 = arith.constant 0 : i32
    %c0_i32_1 = arith.constant 0 : i32
    return %arg0, %c0_i32, %c0_i32_0 : i32, i32, i32
  }
  func.func @transform_1(%arg0: i32) -> (i32, i32, i32) {
    %c0_i32 = arith.constant 0 : i32
    %c0_i32_0 = arith.constant 0 : i32
    %c0_i32_1 = arith.constant 0 : i32
    %c0_i32_2 = arith.constant 0 : i32
    return %c0_i32, %c0_i32_0, %c0_i32_1 : i32, i32, i32
  }
  func.func @transform_2(%arg0: i32) -> (i32, i32) {
    %c0_i32 = arith.constant 0 : i32
    %c0_i32_0 = arith.constant 0 : i32
    %c0_i32_1 = arith.constant 0 : i32
    return %c0_i32, %c0_i32_0 : i32, i32
  }
  func.func @transform_3(%arg0: i32) -> (i32, i32, i32) {
    %c0_i32 = arith.constant 0 : i32
    %c0_i32_0 = arith.constant 0 : i32
    %c0_i32_1 = arith.constant 0 : i32
    return %arg0, %c0_i32, %c0_i32_0 : i32, i32, i32
  }
}

</mosaic_0001>

<bundles_post_ra>
// kernel: tpu_custom_call.1
= control target key start
LH: loop header
LB: loop body
LE: loop exit
PB: predicated region body
PF: predicated region fallthrough
CT: control target
= control target key end

     0   :  { %8 = vsyncpa [#allocation3], 0  ;;  %s785_s0 = inlined_call_operand.vmem [shape: f32[2,4,256], index: 0, kind: input, shape index: {}]   ;;  %s786_s1 = inlined_call_operand.vmem [shape: f32[3,8,4], index: 1, kind: input, shape index: {}]   ;;  %s787_s2 = inlined_call_operand.vmem [shape: f32[8,1], index: 2, kind: input, shape index: {}]   ;;  %s788_s3 = inlined_call_operand.hbm [shape: f32[2,8,256], index: 3, kind: output, shape index: {}]  }
   0x1   :  { %10 = vsyncpa [#allocation3 + $0x1], 0  ;;  %s677_s12 = smov 0   ;;  %s679_s13 = smov 0  }
   0x2   :  { %s681_s14 = smov 0   ;;  %s683_s15 = smov 0  }
   0x3 LB: > { %s698_s16 = sadd.s32 4294967295, %s650_s15   ;;  %s520_s17 = sadd.s32 4294967294, %s650_s15   ;;  %s650_s15 = sphi %s683_s15, %s794_s15   ;;  %s646_s14 = sphi %s681_s14, %s793_s14   ;;  %s642_s13 = sphi %s679_s13, %s792_s13   ;;  %s638_s12 = sphi %s677_s12, %s791_s12  }
   0x4   : > { %s702_s18 = sadd.s32 1, %s650_s15   ;;  %s91_s19 = sadd.s32 1, %s646_s14 }
   0x5   : > { %s88_s20 = ssub.s32 %s650_s15, %s702_s18  ;;  %p101_p0 = scmp.ne.s32.totalorder %s646_s14, %s642_s13 }
   0x6   : > { %p89_p1 = scmp.eq.s32.totalorder %s88_s20, 0  ;;  %p102_p2 = scmp.eq.s32.totalorder %s698_s16, 1 }
   0x7   : > { %p107_p3 = scmp.ne.s32.totalorder %s642_s13, %s638_s12  ;;  %p108_p4 = scmp.eq.s32.totalorder %s520_s17, 1 }
   0x8   : > { %s713_s21 = scalar_select %p89_p1, %s646_s14, %s91_s19  }
   0x9   : > { %p715_p5 = por %p102_p2, %p101_p0  ;;  %p719_p6 = por %p108_p4, %p107_p3 }
   0xa   : > { %p523_p7 = scmp.ge.s32.totalorder %s650_s15, 1  ;;  %p140_p8 = scmp.lt.s32.totalorder %s650_s15, 3 }
   0xc   : > { %p141_p9 = pnand %p523_p7, %p140_p8 }
   0xd   : > { %p164_p10 = scmp.lt.s32.totalorder (!%p141_p9), %s698_s16, 1  ;;  %s654_s29 = smov (!%p141_p9), 126  }
   0xe   : > { %144 = sbr.rel (%p141_p9) target bundleno = 362 (0x16a), region = 32  ;;  %s655_s30 = smov (!%p141_p9), 127  }
   0xf   : > { %s161_s17 = sand.u32 (!%p141_p9), 1, %s642_s13   ;;  %s544_s20 = sshll.u32 (!%p141_p9), %s698_s16, 8 }
  0x10   : > { %s524_s19 = sshll.u32 (!%p141_p9), %s161_s17, 4  ;;  %s656_s4 = smov (!%p141_p9), [#allocation2]  }
  0x13   : > { %v652_v0 = vmov 0.0   ;;  %s165_s24 = scalar_select %p164_p10, %s698_s16, 1  ;;  %vm192_vm0 = vcmask 1043456   ;;  %v653_v2 = vmov 0   ;;  %vm188_vm1 = vcmask 31744   ;;  %v169_v4 = vld [vmem:[%s786_s1] sm:$0xff] }
  0x14   : > { %263 = vmatprep.mubr.f32.mxu0 %v652_v0  ;;  %341 = vmatprep.mubr.f32.mxu1 %v652_v0  ;;  %v174_v5 = vld [vmem:[%s787_s2] sm:$0xff]  ;;  %v183_v6 = vlaneseq  ;;  %v527_v14 = vld [vmem:[%s786_s1 + $0x8] sm:$0xff]  ;;  %v528_v17 = vld [vmem:[%s786_s1 + $0x10] sm:$0xff]  ;;  %s594_s16 = sshll.u32 %s656_s4, 4  ;;  %s595_s16 = int_to_ptr.vmem [resolvable:$false] %s594_s16 }
  0x15   : > { %s543_s25 = sshll.u32 %s165_s24, 3  ;;  %588 = vset.pattern.permute.xlu0 %v653_v2  ;;  %s163_s24 = scalar_lea.vmem [#allocation2], %s524_s19 }
  0x16   : > { %s168_s28 = scalar_lea.vmem %s785_s0, %s543_s25  ;;  %v184_v7 = vand.u32 127, %v183_v6  ;;  %s461_s25 = sshll.u32 %s163_s24, 4  ;;  %s462_s25 = int_to_ptr.vmem [resolvable:$true] %s461_s25 }
  0x17   : > { %v175_v1 = vld [vmem:[%s168_s28] sm:$0xff]  ;;  %s459_s28 = scalar_lea.hbm %s788_s3, %s544_s20  ;;  %s596_s5 = scalar_lea.vmem %s595_s16, 512 }
  0x18   : > { %348 = vrot.lane.b32.xlu1 %v175_v1, %s654_s29  ;;  %179 = vrot.lane.b32.xlu0 %v175_v1, %s655_s30  ;;  %v177_v3 = vcombine.high %v175_v1, %v175_v1  ;;  %vm185_vm2 = vcmp.lt.s32.totalorder %v184_v7, 127  ;;  %vm352_vm3 = vcmp.lt.s32.totalorder %v184_v7, 126  ;;  %p597_p0 = scmp.lt.s32.totalorder %s462_s25, %s595_s16 }
  0x1a   : > { %532 = vmatprep.subr.msk.mxu1 %vm192_vm0, %v177_v3 }
  0x1b   : > { %533 = vmatpush1.msk.msra.mxu1 %vm192_vm0, %v175_v1 }
  0x1c   : > { %350 = vrot.lane.b32.xlu1 %v177_v3, %s654_s29  ;;  %181 = vrot.lane.b32.xlu0 %v177_v3, %s655_s30  ;;  %s447_s29 = scalar_lea.sflag [#allocation3], %s161_s17  ;;  %s590_s30 = scalar_lea.vmem %s462_s25, 256 }
  0x1d   : > { %534 = vmatmul.mubr.msk.f32.vlgmr.msra.gmra.mxu1 %vm188_vm1, %v169_v4  ;;  %p591_p11 = scmp.ne.s32.totalorder %s462_s25, %s590_s30  ;;  %p598_p1 = scmp.lt.s32.totalorder %s596_s5, %s590_s30 }
  0x1f   : > { %p592_p12 = pnand %p591_p11, %p715_p5  ;;  %p599_p2 = por %p598_p1, %p597_p0 }
  0x20   : > { %439 = vperm.xlu0 %588, %v174_v5  }
  0x21   : > { %p593_p13 = pneg %p592_p12 }
  0x23   : > { %p600_p3 = pnand %p599_p2, %p593_p13 }
  0x8a   : > { %v349_v8 = vpop.permute.xlu1 %348  ;;  %v180_v9 = vpop.permute.xlu0 %179 }
  0x8e   : > { %v351_v10 = vpop.permute.xlu1 %350  ;;  %v182_v11 = vpop.permute.xlu0 %181 }
  0x8f   : > { %v187_v12 = vsel %vm185_vm2, %v182_v11, %v180_v9  ;;  %v186_v13 = vsel %vm185_vm2, %v180_v9, %v182_v11  ;;  %v354_v15 = vsel %vm352_vm3, %v351_v10, %v349_v8  ;;  %v353_v16 = vsel %vm352_vm3, %v349_v8, %v351_v10 }
  0x90   : > { %529 = vmatprep.subr.msk.mxu0 %vm192_vm0, %v187_v12 }
  0x91   : > { %530 = vmatpush1.msk.msra.mxu0 %vm192_vm0, %v186_v13 }
  0x92   : > { %531 = vmatmul.mubr.msk.f32.vlgmr.msra.gmra.mxu0 %vm188_vm1, %v527_v14  ;;  %535 = vmatprep.subr.msk.mxu0 %vm192_vm0, %v354_v15 }
  0x93   : > { %536 = vmatpush1.msk.msra.mxu0 %vm192_vm0, %v353_v16  ;;  %428 = vmatprep.mubr.f32.mxu0 %v652_v0 }
  0x96   : > { %537 = vmatmul.mubr.msk.f32.vlgmr.msra.gmra.mxu0 %vm188_vm1, %v528_v17 }
  0x9b   : > { %v440_v24 = vpop.permute.xlu0 %439 }
  0xdd   : > { %v343_v18 = vpop.f32.mrf.mxu1 }
  0xdf   : > { %v345_v21 = vpop.f32.mrf.mxu1 }
 0x152   : > { %v265_v19 = vpop.f32.mrf.mxu0 }
 0x153   : > { %v344_v22 = vadd.f32 %v343_v18, %v265_v19 }
 0x154   : > { %v267_v20 = vpop.f32.mrf.mxu0 }
 0x155   : > { %v346_v25 = vadd.f32 %v345_v21, %v267_v20 }
 0x156   : > { %v430_v23 = vpop.f32.mrf.mxu0 }
 0x157   : > { %v435_v26 = vadd.f32 %v430_v23, %v344_v22 }
 0x158   : > { %v432_v27 = vpop.f32.mrf.mxu0 }
 0x159   : > { %v436_v28 = vadd.f32 %v432_v27, %v346_v25  ;;  %v442_v29 = vadd.f32 %v440_v24, %v435_v26 }
 0x15b   : > { %v443_v30 = vadd.f32 %v440_v24, %v436_v28  ;;  %444 = vst [vmem:[%s163_s24] sm:$0xff] %v442_v29 }
 0x15d   : > { %445 = vst [vmem:[%s163_s24 + $0x8] sm:$0xff] %v443_v30 }
 0x15e   : > { %603 = shalt.err (!%p600_p3)
}
 0x15f   : > { %s604_s6 = scalar_lea.hbm %s459_s28, 256  ;;  %s608_s9 = scalar_lea.hbm %s788_s3, 512 }
 0x160   : > { %p605_p4 = scmp.ne.s32.totalorder %s459_s28, %s604_s6  ;;  %p609_p9 = scmp.lt.s32.totalorder %s459_s28, %s788_s3 }
 0x161   : > { %p610_p10 = scmp.lt.s32.totalorder %s608_s9, %s604_s6 }
 0x162   : > { %p606_p7 = pnand %p605_p4, %p715_p5 }
 0x163   : > { %p611_p11 = por %p610_p10, %p609_p9 }
 0x164   : > { %p607_p8 = pneg %p606_p7 }
 0x166   : > { %p612_p12 = pnand %p611_p11, %p607_p8 }
 0x168   : > { %615 = shalt.err (!%p612_p12)
}
 0x169   : > { %545 = dma.vmem_to_hbm [thread:$0]  (%p715_p5), %s462_s25, 256, %s459_s28, %s447_s29  }
 0x16a PF: > { %p551_p13 = scmp.ge.s32.totalorder %s650_s15, 2  ;;  %s473_s17 = sand.u32 1, %s638_s12  }
 0x16b   : > { %s474_s19 = scalar_lea.sflag [#allocation3], %s473_s17 }
 0x16c   : > { %p548_p0 = pnand %p551_p13, %p719_p6 }
 0x16e   : > { %p549_p1 = pneg %p548_p0 }
 0x170   : > { %633 = dma.done.wait (%p549_p1), %s474_s19, 256  }
 0x171   : > { %635 = vsyncadd (%p549_p1), %s474_s19, 4294967040  ;;  %p13_p2 = scmp.ge.s32.totalorder %s702_s18, 4   ;;  %s791_s12 = smov %s642_s13 }
 0x172   : > { %s792_s13 = smov %s646_s14  ;;  %s793_s14 = smov %s713_s21 }
 0x173   : > { %s794_s15 = smov %s702_s18  ;;  %15 = sbr.rel (!%p13_p2) target bundleno = 3 (0x3), region = 69 }
 0x178   :  { %479 = vsyncpa [#allocation3], 1 }
 0x179   :  { %481 = vsyncpa [#allocation3 + $0x1], 1 }

</bundles_post_ra>
